<compile_context>
chip_gen: v6e
topology: v6e:2x2x1
jax: 0.10.0
libtpu: 0.0.40
codegen_flags: <defaults>
</compile_context>

<pallas_src>
import functools

import numpy as np
import jax
import jax.numpy as jnp
from jax import lax
from jax.experimental import pallas as pl
from jax.experimental.pallas import tpu as pltpu

# Module-consistent shapes (channels must be divisible by reduction=16).
B, C, H, W = 2, 32, 16, 16
REDUCTION = 16
CR = C // REDUCTION            # hidden width of the shared MLP (=2)
K = 7                          # spatial-attention conv kernel size
PAD = K // 2                   # "same" padding (=3)


def _build_conv_matrix(conv_w, h, w):
    """Dense (2*H*W, H*W) matrix M so that the PyTorch 'same' 7x7 conv over the
    2-channel [avg|max] map equals  [avg_flat | max_flat] @ M.
    Index layout: row = cin*H*W + p_in, col = p_out; invalid (padding) taps are 0."""
    k = conv_w.shape[-1]
    pad = k // 2
    hw = h * w
    pos = np.arange(hw)
    y, xc = pos // w, pos % w
    # tap offsets: i = y_in - y_out + pad, j = x_in - x_out + pad
    di = y[:, None] - y[None, :] + pad                       # (HW_in, HW_out)
    dj = xc[:, None] - xc[None, :] + pad
    valid = (di >= 0) & (di < k) & (dj >= 0) & (dj < k)
    tap = np.clip(di, 0, k - 1) * k + np.clip(dj, 0, k - 1)  # i*k + j
    idx = np.where(valid[None],
                   np.arange(2)[:, None, None] * (k * k) + tap[None],
                   2 * k * k).astype(np.int32)               # (2, HW, HW); 2*k*k == "zero" slot
    idx = idx.reshape(2 * hw, hw)
    w_flat = jnp.concatenate(
        [conv_w.reshape(-1), jnp.zeros((1,), conv_w.dtype)])  # (2*k*k + 1,)
    return w_flat[idx]                                         # (2*HW, HW) gather from 99-entry table


def _cbam_kernel(x_ref, w1_ref, w2_ref, m_ref, o_ref, *, c, hw):
    # x_ref:  (1, C, HW)  VMEM  one image; channels on sublanes, flat spatial on lanes
    # w1_ref: (CR, C)     VMEM  first Linear weight (torch layout, no bias)
    # w2_ref: (C, CR)     VMEM  second Linear weight
    # m_ref:  (2*HW, HW)  VMEM  dense "same-padding" conv matrix for the 7x7 conv
    # o_ref:  (1, C, HW)  VMEM  output
    x = x_ref[0]                                                    # (C, HW) f32

    # ---------------- Channel attention ----------------
    avg = jnp.sum(x, axis=1, keepdims=True) * (1.0 / float(hw))     # (C, 1) adaptive avg pool
    mx = jnp.max(x, axis=1, keepdims=True)                          # (C, 1) adaptive max pool
    pooled = jnp.concatenate([avg, mx], axis=1)                     # (C, 2)

    # Shared MLP, transposed:  mlp(v)^T = W2 @ relu(W1 @ v^T).  Keeps channels on
    # sublanes so the attention column broadcasts against (C, HW) with no relayout.
    hid = jnp.maximum(
        jnp.dot(w1_ref[...], pooled, preferred_element_type=jnp.float32), 0.0)   # (CR, 2)
    mlp = jnp.dot(w2_ref[...], hid, preferred_element_type=jnp.float32)          # (C, 2)
    ca = jax.nn.sigmoid(mlp[:, 0:1] + mlp[:, 1:2])                  # (C, 1)
    x_ca = x * ca                                                   # (C, HW)

    # ---------------- Spatial attention ----------------
    avg_map = jnp.sum(x_ca, axis=0, keepdims=True) * (1.0 / float(c))   # (1, HW)
    max_map = jnp.max(x_ca, axis=0, keepdims=True)                      # (1, HW)
    cat = jnp.concatenate([avg_map, max_map], axis=1)                   # (1, 2*HW)

    # 7x7 "same" conv over the 2-channel map == a single MXU matmul.
    conv = jnp.dot(cat, m_ref[...], preferred_element_type=jnp.float32)  # (1, HW)
    sa = jax.nn.sigmoid(conv)                                             # (1, HW)

    o_ref[0] = (x_ca * sa).astype(o_ref.dtype)


def cbam_pallas(x, w1, w2, conv_w):
    b, c, h, w = x.shape
    hw = h * w
    x2 = x.reshape(b, c, hw)                       # lane-dense layout (free reshape in XLA)
    conv_mat = _build_conv_matrix(conv_w, h, w)    # (2*HW, HW) f32, ~512 KiB
    cr = w1.shape[0]

    kernel = functools.partial(_cbam_kernel, c=c, hw=hw)
    out2 = pl.pallas_call(
        kernel,
        out_shape=jax.ShapeDtypeStruct((b, c, hw), x.dtype),
        grid=(b,),
        in_specs=[
            pl.BlockSpec((1, c, hw), lambda i: (i, 0, 0)),        # one image per grid step
            pl.BlockSpec((cr, c), lambda i: (0, 0)),              # W1 (constant block -> loaded once)
            pl.BlockSpec((c, cr), lambda i: (0, 0)),              # W2
            pl.BlockSpec((2 * hw, hw), lambda i: (0, 0)),         # dense conv matrix
        ],
        out_specs=pl.BlockSpec((1, c, hw), lambda i: (i, 0, 0)),
        compiler_params=pltpu.CompilerParams(
            dimension_semantics=("parallel",)),                   # shard batch across v7x TCs
    )(x2, w1, w2, conv_mat)
    return out2.reshape(b, c, h, w)


def cbam_reference(x, w1, w2, conv_w):
    """Pure-JAX reference mirroring the PyTorch forward exactly."""
    avg = x.mean(axis=(2, 3))                     # (B, C)
    mx = x.max(axis=(2, 3))                       # (B, C)

    def mlp(v):                                   # torch Linear: y = v @ W.T
        return jnp.maximum(v @ w1.T, 0.0) @ w2.T

    ca = jax.nn.sigmoid(mlp(avg) + mlp(mx))       # (B, C)
    x_ca = x * ca[:, :, None, None]

    avg_map = x_ca.mean(axis=1, keepdims=True)
    max_map = x_ca.max(axis=1, keepdims=True)
    cat = jnp.concatenate([avg_map, max_map], axis=1)   # (B, 2, H, W)
    conv = lax.conv_general_dilated(
        cat, conv_w, window_strides=(1, 1), padding=((PAD, PAD), (PAD, PAD)),
        dimension_numbers=("NCHW", "OIHW", "NCHW"))
    sa = jax.nn.sigmoid(conv)                     # (B, 1, H, W)
    return x_ca * sa


if __name__ == "__main__":
    key = jax.random.PRNGKey(0)
    kx, k1, k2, k3 = jax.random.split(key, 4)

    x = jax.random.normal(kx, (B, C, H, W), jnp.float32)
    # Deterministic synthetic parameters (same shapes as the nn.Module):
    w1 = jax.random.normal(k1, (CR, C), jnp.float32) * 0.1            # Linear(C -> C//16), no bias
    w2 = jax.random.normal(k2, (C, CR), jnp.float32) * 0.1            # Linear(C//16 -> C), no bias
    conv_w = jax.random.normal(k3, (1, 2, K, K), jnp.float32) * 0.05  # Conv2d(2, 1, 7, pad=3), no bias

    out = jax.block_until_ready(cbam_pallas(x, w1, w2, conv_w))
    ref = jax.block_until_ready(cbam_reference(x, w1, w2, conv_w))

    assert out.shape == x.shape and out.dtype == x.dtype
    # Both the kernel (MXU matmuls) and the XLA reference (MXU conv/dots) run f32
    # multiplies at default TPU precision (bf16 products, f32 accumulate), so their
    # independent rounding bounds achievable agreement to ~1e-3; tolerance reflects that.
    assert jnp.allclose(out, ref, atol=5e-3, rtol=5e-3), \
        f"max abs diff = {jnp.max(jnp.abs(out - ref))}"
    print("KERNEL_OK")
</pallas_src>

<mosaic_0001>
module attributes {stable_mosaic.version = 11 : i64} {
  func.func @_cbam_kernel(%arg0: i32, %arg1: memref<1x32x256xf32, #tpu.memory_space<vmem>>, %arg2: memref<2x32xf32, #tpu.memory_space<vmem>>, %arg3: memref<32x2xf32, #tpu.memory_space<vmem>>, %arg4: memref<512x256xf32, #tpu.memory_space<vmem>>, %arg5: memref<1x32x256xf32, #tpu.memory_space<vmem>>) attributes {dimension_semantics = [#tpu.dimension_semantics<parallel>], iteration_bounds = array<i64: 2>, scalar_prefetch = 0 : i64, scratch_operands = 0 : i64, tpu.core_type = #tpu.core_type<tc>, window_params = [{transform_indices = @transform_0, window_bounds = array<i64: 1, 32, 256>}, {pipeline_mode = #tpu.pipeline_mode<synchronous>, transform_indices = @transform_1, window_bounds = array<i64: 2, 32>}, {pipeline_mode = #tpu.pipeline_mode<synchronous>, transform_indices = @transform_2, window_bounds = array<i64: 32, 2>}, {pipeline_mode = #tpu.pipeline_mode<synchronous>, transform_indices = @transform_3, window_bounds = array<i64: 512, 256>}, {transform_indices = @transform_4, window_bounds = array<i64: 1, 32, 256>}]} {
    %c0 = arith.constant 0 : index
    %c0_0 = arith.constant 0 : index
    %c0_1 = arith.constant 0 : index
    %0 = vector.load %arg1[%c0, %c0_0, %c0_1] : memref<1x32x256xf32, #tpu.memory_space<vmem>>, vector<1x32x256xf32>
    %1 = vector.shape_cast %0 : vector<1x32x256xf32> to vector<32x256xf32>
    %cst = arith.constant dense<0.000000e+00> : vector<32xf32>
    %2 = vector.multi_reduction <add>, %1, %cst [1] : vector<32x256xf32> to vector<32xf32>
    %3 = vector.shape_cast %2 : vector<32xf32> to vector<32x1xf32>
    %cst_2 = arith.constant 3.906250e-03 : f32
    %4 = vector.broadcast %cst_2 : f32 to vector<32x1xf32>
    %5 = arith.mulf %3, %4 : vector<32x1xf32>
    %cst_3 = arith.constant dense<0xFF800000> : vector<32xf32>
    %6 = vector.multi_reduction <maximumf>, %1, %cst_3 [1] : vector<32x256xf32> to vector<32xf32>
    %7 = vector.shape_cast %6 : vector<32xf32> to vector<32x1xf32>
    %8 = tpu.concatenate %5, %7 in 1 : vector<32x1xf32>, vector<32x1xf32> -> vector<32x2xf32>
    %c0_4 = arith.constant 0 : index
    %c0_5 = arith.constant 0 : index
    %9 = vector.load %arg2[%c0_4, %c0_5] : memref<2x32xf32, #tpu.memory_space<vmem>>, vector<2x32xf32>
    %cst_6 = arith.constant dense<0.000000e+00> : vector<2x2xf32>
    %10 = tpu.matmul %9, %8, %cst_6 {dimension_numbers = #tpu.dot_dimension_numbers<[1], [0], [0], [1], [0, 0, 1, 1], [], []>} : vector<2x32xf32>, vector<32x2xf32>, vector<2x2xf32> -> vector<2x2xf32>
    %cst_7 = arith.constant 0.000000e+00 : f32
    %11 = vector.broadcast %cst_7 : f32 to vector<2x2xf32>
    %12 = arith.maximumf %10, %11 : vector<2x2xf32>
    %c0_8 = arith.constant 0 : index
    %c0_9 = arith.constant 0 : index
    %13 = vector.load %arg3[%c0_8, %c0_9] : memref<32x2xf32, #tpu.memory_space<vmem>>, vector<32x2xf32>
    %cst_10 = arith.constant dense<0.000000e+00> : vector<32x2xf32>
    %14 = tpu.matmul %13, %12, %cst_10 {dimension_numbers = #tpu.dot_dimension_numbers<[1], [0], [0], [1], [0, 0, 1, 1], [], []>} : vector<32x2xf32>, vector<2x2xf32>, vector<32x2xf32> -> vector<32x2xf32>
    %15 = vector.extract_strided_slice %14 {offsets = [0, 0], sizes = [32, 1], strides = [1, 1]} : vector<32x2xf32> to vector<32x1xf32>
    %16 = vector.extract_strided_slice %14 {offsets = [0, 1], sizes = [32, 1], strides = [1, 1]} : vector<32x2xf32> to vector<32x1xf32>
    %17 = arith.addf %15, %16 : vector<32x1xf32>
    %18 = arith.negf %17 : vector<32x1xf32>
    %19 = math.exp %18 : vector<32x1xf32>
    %cst_11 = arith.constant 1.000000e+00 : f32
    %20 = vector.broadcast %cst_11 : f32 to vector<32x1xf32>
    %21 = arith.addf %20, %19 : vector<32x1xf32>
    %22 = arith.divf %20, %21 : vector<32x1xf32>
    %23 = vector.broadcast %22 : vector<32x1xf32> to vector<32x256xf32>
    %24 = arith.mulf %1, %23 : vector<32x256xf32>
    %cst_12 = arith.constant dense<0.000000e+00> : vector<256xf32>
    %25 = vector.multi_reduction <add>, %24, %cst_12 [0] : vector<32x256xf32> to vector<256xf32>
    %26 = vector.shape_cast %25 : vector<256xf32> to vector<1x256xf32>
    %cst_13 = arith.constant 3.125000e-02 : f32
    %27 = vector.broadcast %cst_13 : f32 to vector<1x256xf32>
    %28 = arith.mulf %26, %27 : vector<1x256xf32>
    %cst_14 = arith.constant dense<0xFF800000> : vector<256xf32>
    %29 = vector.multi_reduction <maximumf>, %24, %cst_14 [0] : vector<32x256xf32> to vector<256xf32>
    %30 = vector.shape_cast %29 : vector<256xf32> to vector<1x256xf32>
    %31 = tpu.concatenate %28, %30 in 1 : vector<1x256xf32>, vector<1x256xf32> -> vector<1x512xf32>
    %c0_15 = arith.constant 0 : index
    %c0_16 = arith.constant 0 : index
    %32 = vector.load %arg4[%c0_15, %c0_16] : memref<512x256xf32, #tpu.memory_space<vmem>>, vector<512x256xf32>
    %cst_17 = arith.constant dense<0.000000e+00> : vector<1x256xf32>
    %33 = tpu.matmul %31, %32, %cst_17 {dimension_numbers = #tpu.dot_dimension_numbers<[1], [0], [0], [1], [0, 0, 1, 1], [], []>} : vector<1x512xf32>, vector<512x256xf32>, vector<1x256xf32> -> vector<1x256xf32>
    %34 = arith.negf %33 : vector<1x256xf32>
    %35 = math.exp %34 : vector<1x256xf32>
    %cst_18 = arith.constant 1.000000e+00 : f32
    %36 = vector.broadcast %cst_18 : f32 to vector<1x256xf32>
    %37 = arith.addf %36, %35 : vector<1x256xf32>
    %38 = arith.divf %36, %37 : vector<1x256xf32>
    %39 = vector.broadcast %38 : vector<1x256xf32> to vector<32x256xf32>
    %40 = arith.mulf %24, %39 : vector<32x256xf32>
    %c0_19 = arith.constant 0 : index
    %c0_20 = arith.constant 0 : index
    %c0_21 = arith.constant 0 : index
    %41 = vector.load %arg5[%c0_19, %c0_20, %c0_21] : memref<1x32x256xf32, #tpu.memory_space<vmem>>, vector<1x32x256xf32>
    %42 = vector.shape_cast %41 : vector<1x32x256xf32> to vector<32x256xf32>
    %43 = vector.shape_cast %40 : vector<32x256xf32> to vector<1x32x256xf32>
    tpu.vector_store %arg5[%c0_19, %c0_20, %c0_21], %43 {strides = array<i32>} : memref<1x32x256xf32, #tpu.memory_space<vmem>>, vector<1x32x256xf32>,
    return
  }
  func.func @transform_0(%arg0: i32) -> (i32, i32, i32) {
    %c0_i32 = arith.constant 0 : i32
    %c0_i32_0 = arith.constant 0 : i32
    %c0_i32_1 = arith.constant 0 : i32
    return %arg0, %c0_i32, %c0_i32_0 : i32, i32, i32
  }
  func.func @transform_1(%arg0: i32) -> (i32, i32) {
    %c0_i32 = arith.constant 0 : i32
    %c0_i32_0 = arith.constant 0 : i32
    %c0_i32_1 = arith.constant 0 : i32
    return %c0_i32, %c0_i32_0 : i32, i32
  }
  func.func @transform_2(%arg0: i32) -> (i32, i32) {
    %c0_i32 = arith.constant 0 : i32
    %c0_i32_0 = arith.constant 0 : i32
    %c0_i32_1 = arith.constant 0 : i32
    return %c0_i32, %c0_i32_0 : i32, i32
  }
  func.func @transform_3(%arg0: i32) -> (i32, i32) {
    %c0_i32 = arith.constant 0 : i32
    %c0_i32_0 = arith.constant 0 : i32
    %c0_i32_1 = arith.constant 0 : i32
    return %c0_i32, %c0_i32_0 : i32, i32
  }
  func.func @transform_4(%arg0: i32) -> (i32, i32, i32) {
    %c0_i32 = arith.constant 0 : i32
    %c0_i32_0 = arith.constant 0 : i32
    %c0_i32_1 = arith.constant 0 : i32
    return %arg0, %c0_i32, %c0_i32_0 : i32, i32, i32
  }
}

</mosaic_0001>

<bundles_post_ra>
// kernel: tpu_custom_call.1
= control target key start
LH: loop header
LB: loop body
LE: loop exit
PB: predicated region body
PF: predicated region fallthrough
CT: control target
= control target key end

     0   :  { %9 = vsyncpa [#allocation3], 0  ;;  %s1579_s0 = inlined_call_operand.hbm [shape: f32[2,32,256], index: 0, kind: input, shape index: {}]   ;;  %s1580_s1 = inlined_call_operand.vmem [shape: f32[2,32], index: 1, kind: input, shape index: {}]   ;;  %s1581_s2 = inlined_call_operand.vmem [shape: f32[32,2], index: 2, kind: input, shape index: {}]   ;;  %s1582_s3 = inlined_call_operand.hbm [shape: f32[512,256], index: 3, kind: input, shape index: {}]   ;;  %s1583_s4 = inlined_call_operand.hbm [shape: f32[2,32,256], index: 4, kind: output, shape index: {}]  }
   0x1   :  { %11 = vsyncpa [#allocation3 + $0x1], 0 }
   0x2   :  { %12 = vsyncpa [#allocation6], 0 }
   0x3   :  { %13 = vsyncpa [#allocation4], 0 }
   0x4   :  { %15 = vsyncpa [#allocation4 + $0x1], 0  ;;  %s1277_s15 = smov 0   ;;  %s1279_s16 = smov 0  }
   0x5   :  { %s1281_s17 = smov 0   ;;  %s1283_s18 = smov 0  }
   0x6 LB: > { %s1298_s19 = sadd.s32 4294967295, %s1239_s18   ;;  %s967_s20 = sadd.s32 4294967294, %s1239_s18   ;;  %s1239_s18 = sphi %s1283_s18, %s1605_s18   ;;  %s1235_s17 = sphi %s1281_s17, %s1604_s17   ;;  %s1231_s16 = sphi %s1279_s16, %s1603_s16   ;;  %s1227_s15 = sphi %s1277_s15, %s1602_s15  }
   0x7   : > { %p41_p0 = scmp.ne.s32.totalorder %s1231_s16, %s1227_s15  ;;  %p1584_p1 = scmp.eq.s32.totalorder %s1298_s19, 0 }
   0x8   : > { %p134_p3 = scmp.eq.s32.totalorder %s967_s20, 1  ;;  %p968_p5 = scmp.ge.s32.totalorder %s1239_s18, 1 }
   0x9   : > { %p1307_p4 = por %p1584_p1, %p41_p0  ;;  %p141_p7 = scmp.lt.s32.totalorder %s1239_s18, 3 }
   0xa   : > { %p1312_p6 = por %p134_p3, %p41_p0  ;;  %s1241_s24 = smov [#allocation5]  }
   0xb   : > { %s1588_s21 = scalar_select %p1307_p4, 1, 0 }
   0xc   : > { %s1589_s22 = scalar_select %p1312_p6, 1, 0 }
   0xd   : > { %p1317_p8 = pnand %p968_p5, %p141_p7  ;;  %s159_s25 = sshll.u32 %s1241_s24, 4  ;;  %s160_s25 = int_to_ptr.vmem [resolvable:$true] %s159_s25 }
   0xe   : > { %s1331_s27 = sadd.s32 1, %s1239_s18   ;;  %s28_s28 = sadd.s32 1, %s1235_s17 }
   0xf   : > { %s1590_s23 = scalar_select %p1317_p8, 1, 0 }
  0x10   : > { %p1034_p9 = pneg %p1317_p8  ;;  %s25_s29 = ssub.s32 %s1239_s18, %s1331_s27 }
  0x11   : > { %s1128_s30 = scalar_lea.vmem %s160_s25, 16384  ;;  %p1136_p5 = scmp.lt.s32.totalorder %s160_s25, %s160_s25 }
  0x12   : > { %p1326_p11 = pnand %p1034_p9, %p1584_p1  ;;  %p1129_p13 = scmp.ne.s32.totalorder %s160_s25, %s1128_s30 }
  0x13   : > { %p1137_p7 = scmp.lt.s32.totalorder %s1128_s30, %s1128_s30 }
  0x14   : > { %p1119_p12 = pneg %p1326_p11 }
  0x15   : > { %p1138_p10 = por %p1137_p7, %p1136_p5 }
  0x16   : > { %p1131_p0 = pnand %p1129_p13, %p1119_p12 }
  0x18   : > { %p1132_p3 = pneg %p1131_p0 }
  0x1a   : > { %p1139_p2 = pnand %p1138_p10, %p1132_p3 }
  0x1c   : > { %1142 = shalt.err (!%p1139_p2)
}
  0x1d   : > { %s1242_s5 = smov 256   ;;  %s1243_s6 = smov 16  }
  0x1e   : > { %1037 = dma.hbm_to_vmem [thread:$0]  (!%p1326_p11), %s1582_s3, 16384, %s160_s25, [#allocation6], %s1242_s5, %s1242_s5, %s1243_s6  }
  0x1f   : > { %p26_p2 = scmp.eq.s32.totalorder %s25_s29, 0  ;;  %p35_p9 = scmp.ne.s32.totalorder %s1235_s17, %s1231_s16 }
  0x20   : > { %p36_p10 = scmp.eq.s32.totalorder %s1239_s18, 0  ;;  %p1047_p12 = scmp.lt.s32.totalorder %s1239_s18, 2 }
  0x21   : > { %s1351_s9 = scalar_select %p26_p2, %s1235_s17, %s28_s28  }
  0x22   : > { %p37_p13 = por %p36_p10, %p35_p9  ;;  %p1592_p0 = scmp.eq.s32.totalorder %s1298_s19, 1 }
  0x23   : > { %s173_s11 = sand.u32 1, %s1235_s17   ;;  %s995_s12 = sshll.u32 %s1239_s18, 10 }
  0x24   : > { %p1355_p3 = por %p1592_p0, %p35_p9  ;;  %s971_s13 = sshll.u32 %s173_s11, 6 }
  0x25   : > { %s1364_s24 = scalar_lea.hbm %s1579_s0, %s995_s12  ;;  %s177_s25 = scalar_lea.vmem [#allocation2], %s971_s13 }
  0x26   : > { %s1593_s10 = scalar_select %p1355_p3, 1, 0 }
  0x27   : > { %s184_s26 = sshll.u32 %s177_s25, 4  ;;  %p1366_p11 = pnand %p1047_p12, %p37_p13  ;;  %s1370_s26 = int_to_ptr.vmem [resolvable:$true] %s184_s26 }
  0x28   : > { %s1372_s29 = scalar_lea.sflag [#allocation3], %s173_s11  ;;  %s1143_s30 = scalar_lea.hbm %s1364_s24, 1024 }
  0x29   : > { %p1144_p5 = scmp.ne.s32.totalorder %s1364_s24, %s1143_s30  ;;  %p1145_p7 = pneg %p1366_p11 }
  0x2a   : > { %s1148_s12 = scalar_lea.hbm %s1579_s0, 2048  ;;  %p1149_p10 = scmp.lt.s32.totalorder %s1364_s24, %s1579_s0 }
  0x2b   : > { %p1146_p2 = pnand %p1145_p7, %p1144_p5  ;;  %p1150_p12 = scmp.lt.s32.totalorder %s1148_s12, %s1143_s30 }
  0x2d   : > { %p1147_p9 = pneg %p1146_p2  ;;  %p1151_p13 = por %p1150_p12, %p1149_p10 }
  0x2f   : > { %p1152_p0 = pnand %p1151_p13, %p1147_p9 }
  0x31   : > { %1155 = shalt.err (!%p1152_p0)
}
  0x32   : > { %s1156_s11 = scalar_lea.vmem %s1370_s26, 1024  ;;  %s1244_s20 = smov [#allocation2]  }
  0x33   : > { %p1157_p1 = scmp.ne.s32.totalorder %s1370_s26, %s1156_s11  ;;  %s1161_s25 = sshll.u32 %s1244_s20, 4  ;;  %s1162_s25 = int_to_ptr.vmem [resolvable:$false] %s1161_s25 }
  0x34   : > { %s1163_s7 = scalar_lea.vmem %s1162_s25, 2048  ;;  %p1164_p2 = scmp.lt.s32.totalorder %s1370_s26, %s1162_s25 }
  0x35   : > { %p1159_p6 = pnand %p1157_p1, %p1145_p7  ;;  %p1165_p3 = scmp.lt.s32.totalorder %s1163_s7, %s1156_s11 }
  0x37   : > { %p1160_p5 = pneg %p1159_p6  ;;  %p1166_p4 = por %p1165_p3, %p1164_p2 }
  0x39   : > { %p1167_p8 = pnand %p1166_p4, %p1160_p5 }
  0x3b   : > { %1170 = shalt.err (!%p1167_p8)
}
  0x3c   : > { %1041 = dma.hbm_to_vmem [thread:$0]  (!%p1366_p11), %s1364_s24, 1024, %s1370_s26, %s1372_s29, %s1242_s5, %s1242_s5, %s1243_s6  }
  0x3d   : > { %p1595_p1 = scmp.ne.s32.totalorder %s1590_s23, 0 }
  0x3e   : > { %s1399_s30 = sand.u32 (!%p1595_p1), 1, %s1231_s16   ;;  %p1596_p4 = scmp.ne.s32.totalorder (!%p1595_p1), %s1588_s21, 0 }
  0x3f   : > { %196 = sbr.rel (%p1595_p1) target bundleno = 1170 (0x492), region = 36  ;;  %s975_s8 = sshll.u32 (!%p1595_p1), %s1399_s30, 6 }
  0x40   : > { %s199_s12 = scalar_lea.sflag (!%p1595_p1), [#allocation3], %s1399_s30  ;;  %s202_s28 = scalar_lea.vmem (!%p1595_p1), [#allocation2], %s975_s8 }
  0x44   : > { %1214 = dma.done.wait (%p1596_p4), %s199_s12, 1024  }
  0x45   : > { %1216 = vsyncadd (%p1596_p4), %s199_s12, 4294966272  ;;  %p1597_p6 = scmp.eq.s32.totalorder %s1298_s19, 0 }
  0x47   : > { %1218 = dma.done.wait (%p1597_p6), [#allocation6], 16384   ;;  %p1598_p8 = pmov %p1597_p6 }
  0x48   : > { %v1413_v0 = vld [vmem:[%s202_s28 + $0x30] sm:$0xff]  ;;  %v1415_v1 = vld [vmem:[%s202_s28 + $0x38] sm:$0xff]  ;;  %v1417_v2 = vld [vmem:[%s202_s28 + $0x20] sm:$0xff]  ;;  %v1245_v16 = vmov 0.0   ;;  %vm1246_vm0 = vmmov 0   ;;  %vm267_vm1 = vcmask 7168  }
  0x49   : > { %1220 = vsyncadd (%p1598_p8), [#allocation6], 4294950912  ;;  %v264_v3 = vmax.f32 %v1413_v0, %v1415_v1  ;;  %v248_v4 = vadd.f32 %v1415_v1, %v1413_v0  ;;  %v1423_v5 = vld [vmem:[%s202_s28 + $0x28] sm:$0xff]  ;;  %v1425_v6 = vld [vmem:[%s202_s28 + $0x10] sm:$0xff]  ;;  %1007 = vmatprep.subr.mxu0 %v1245_v16  ;;  %1015 = vmatprep.mubr.msk.f32.mxu0 %vm1246_vm0, %v1245_v16  ;;  %vm273_vm2 = vcmask 261120   ;;  %vm352_vm3 = vcmask 15360  }
  0x4a   : > { %v1427_v7 = vld [vmem:[%s202_s28 + $0x18] sm:$0xff]  ;;  %v245_v8 = vadd.f32 %v1423_v5, %v1417_v2  ;;  %v1433_v10 = vld [vmem:[%s202_s28] sm:$0xff]  ;;  %v1435_v11 = vld [vmem:[%s202_s28 + $0x8] sm:$0xff]  ;;  %v261_v12 = vmax.f32 %v1417_v2, %v1423_v5  ;;  %vm365_vm4 = vcmask 1041408   ;;  %s1247_s20 = smov 127   ;;  %v1248_v45 = vmov 0  }
  0x4b   : > { %265 = vmax.xlane.f32.xlu1 %v264_v3  ;;  %249 = vadd.xlane.f32.xlu0 %v248_v4  ;;  %v242_v9 = vadd.f32 %v1427_v7, %v1425_v6  ;;  %v239_v13 = vadd.f32 %v1435_v11, %v1433_v10  ;;  %v258_v14 = vmax.f32 %v1425_v6, %v1427_v7  ;;  %v272_v32 = vld [vmem:[%s1580_s1] sm:$0x3]  ;;  %v349_v38 = vld [vmem:[%s1581_s2 + $0x8] sm:$0xff]  ;;  %v350_v39 = vld [vmem:[%s1581_s2 + $0x10] sm:$0xff]  ;;  %s996_s25 = sshll.u32 %s1298_s19, 10  ;;  %s230_s7 = scalar_lea.vmem [#allocation7], %s975_s8 }
  0x4c   : > { %v255_v15 = vmax.f32 %v1433_v10, %v1435_v11  ;;  %v348_v34 = vld [vmem:[%s1581_s2] sm:$0xff]  ;;  %v351_v40 = vld [vmem:[%s1581_s2 + $0x18] sm:$0xff]  ;;  %1091 = vset.pattern.permute.xlu1 %v1248_v45  ;;  %1092 = vset.pattern.permute.xlu0 %v1248_v45  ;;  %v594_v48 = vld [vmem:[#allocation5 + $0xf0] sm:$0xff]  ;;  %s884_s12 = sshll.u32 %s230_s7, 4  ;;  %s1530_s8 = scalar_lea.hbm %s1583_s4, %s996_s25  ;;  %s1532_s12 = int_to_ptr.vmem [resolvable:$true] %s884_s12 }
  0x4d   : > { %1020 = vmatprep.mubr.msk.f32.mxu1 %vm352_vm3, %v348_v34  ;;  %v595_v46 = vld [vmem:[#allocation5 + $0xf8] sm:$0xff]  ;;  %v658_v49 = vld [vmem:[#allocation5 + $0x2f0] sm:$0xff]  ;;  %v593_v50 = vld [vmem:[#allocation5 + $0xe8] sm:$0xff]  ;;  %s871_s21 = scalar_lea.sflag [#allocation4], %s1399_s30  ;;  %s1171_s23 = scalar_lea.vmem %s1532_s12, 1024 }
  0x4e   : > { %v659_v47 = vld [vmem:[#allocation5 + $0x2f8] sm:$0xff]  ;;  %v657_v51 = vld [vmem:[#allocation5 + $0x2e8] sm:$0xff]  ;;  %v592_v52 = vld [vmem:[#allocation5 + $0xe0] sm:$0xff]  ;;  %p1172_p3 = scmp.ne.s32.totalorder %s1532_s12, %s1171_s23  ;;  %p1599_p11 = scmp.ne.s32.totalorder %s1593_s10, 0 }
  0x4f   : > { %246 = vadd.xlane.f32.xlu0 %v245_v8  ;;  %243 = vadd.xlane.f32.xlu1 %v242_v9  ;;  %v656_v53 = vld [vmem:[#allocation5 + $0x2e0] sm:$0xff]  ;;  %v591_v54 = vld [vmem:[#allocation5 + $0xd8] sm:$0xff]  ;;  %v590_v56 = vld [vmem:[#allocation5 + $0xd0] sm:$0xff]  ;;  %s1249_s5 = smov [#allocation7]  }
  0x50   : > { %v655_v55 = vld [vmem:[#allocation5 + $0x2d8] sm:$0xff]  ;;  %v654_v57 = vld [vmem:[#allocation5 + $0x2d0] sm:$0xff]  ;;  %v589_v58 = vld [vmem:[#allocation5 + $0xc8] sm:$0xff]  ;;  %p1173_p7 = pnand %p1172_p3, %p1599_p11  ;;  %s1175_s6 = sshll.u32 %s1249_s5, 4  ;;  %s1176_s6 = int_to_ptr.vmem [resolvable:$false] %s1175_s6 }
  0x51   : > { %v653_v59 = vld [vmem:[#allocation5 + $0x2c8] sm:$0xff]  ;;  %v588_v60 = vld [vmem:[#allocation5 + $0xc0] sm:$0xff]  ;;  %v587_v62 = vld [vmem:[#allocation5 + $0xb8] sm:$0xff]  ;;  %s1177_s24 = scalar_lea.vmem %s1176_s6, 2048  ;;  %p1178_p10 = scmp.lt.s32.totalorder %s1532_s12, %s1176_s6 }
  0x52   : > { %v652_v61 = vld [vmem:[#allocation5 + $0x2c0] sm:$0xff]  ;;  %v651_v63 = vld [vmem:[#allocation5 + $0x2b8] sm:$0xff]  ;;  %v586_v3 = vld [vmem:[#allocation5 + $0xb0] sm:$0xff]  ;;  %p1174_p9 = pneg %p1173_p7  ;;  %p1179_p12 = scmp.lt.s32.totalorder %s1177_s24, %s1171_s23 }
  0x53   : > { %262 = vmax.xlane.f32.xlu0 %v261_v12  ;;  %240 = vadd.xlane.f32.xlu1 %v239_v13  ;;  %v650_v4 = vld [vmem:[#allocation5 + $0x2b0] sm:$0xff]  ;;  %v585_v8 = vld [vmem:[#allocation5 + $0xa8] sm:$0xff]  ;;  %v584_v12 = vld [vmem:[#allocation5 + $0xa0] sm:$0xff] }
  0x54   : > { %v649_v9 = vld [vmem:[#allocation5 + $0x2a8] sm:$0xff]  ;;  %v648_v13 = vld [vmem:[#allocation5 + $0x2a0] sm:$0xff]  ;;  %v634_v45 = vld [vmem:[#allocation5 + $0x230] sm:$0xff]  ;;  %p1180_p13 = por %p1179_p12, %p1178_p10 }
  0x55   : > { %v573_v34 = vld [vmem:[#allocation5 + $0x48] sm:$0xff] }
  0x56   : > { %p1181_p0 = pnand %p1180_p13, %p1174_p9 }
  0x57   : > { %259 = vmax.xlane.f32.xlu0 %v258_v14  ;;  %256 = vmax.xlane.f32.xlu1 %v255_v15  ;;  %v583_v14 = vld [vmem:[#allocation5 + $0x98] sm:$0xff] }
  0x58   : > { %v647_v15 = vld [vmem:[#allocation5 + $0x298] sm:$0xff] }
  0xd4   : > { %v266_v17 = vpop.xlane.xlu1 %265  ;;  %v250_v18 = vpop.xlane.xlu0 %249 }
  0xd5   : > { %v254_v19 = vmul.f32 0.00390625, %v250_v18  ;;  %v581_v18 = vld [vmem:[#allocation5 + $0x88] sm:$0xff] }
  0xd7   : > { %v271_v20 = vsel %vm267_vm1, %v254_v19, %v266_v17  ;;  %v646_v17 = vld [vmem:[#allocation5 + $0x290] sm:$0xff]  ;;  %v645_v19 = vld [vmem:[#allocation5 + $0x288] sm:$0xff] }
  0xd8   : > { %1008 = vmatpush3.msra.mxu0 %v271_v20  ;;  %v247_v21 = vpop.xlane.xlu0 %246  ;;  %v244_v22 = vpop.xlane.xlu1 %243  ;;  %v580_v20 = vld [vmem:[#allocation5 + $0x80] sm:$0xff] }
  0xd9   : > { %1009 = vmatprep.subr.mxu0 %v1245_v16  ;;  %v253_v23 = vmul.f32 0.00390625, %v247_v21  ;;  %v252_v27 = vmul.f32 0.00390625, %v244_v22  ;;  %v644_v21 = vld [vmem:[#allocation5 + $0x280] sm:$0xff]  ;;  %v579_v22 = vld [vmem:[#allocation5 + $0x78] sm:$0xff] }
  0xdc   : > { %v263_v24 = vpop.xlane.xlu0 %262  ;;  %v241_v25 = vpop.xlane.xlu1 %240 }
  0xdd   : > { %v270_v26 = vsel %vm267_vm1, %v253_v23, %v263_v24  ;;  %v251_v28 = vmul.f32 0.00390625, %v241_v25  ;;  %v643_v23 = vld [vmem:[#allocation5 + $0x278] sm:$0xff]  ;;  %v578_v24 = vld [vmem:[#allocation5 + $0x70] sm:$0xff] }
  0xde   : > { %1010 = vmatpush3.msra.mxu0 %v270_v26  ;;  %v642_v25 = vld [vmem:[#allocation5 + $0x270] sm:$0xff]  ;;  %v577_v26 = vld [vmem:[#allocation5 + $0x68] sm:$0xff] }
  0xdf   : > { %1011 = vmatprep.subr.mxu0 %v1245_v16 }
  0xe0   : > { %v260_v29 = vpop.xlane.xlu0 %259  ;;  %v257_v30 = vpop.xlane.xlu1 %256 }
  0xe1   : > { %v269_v31 = vsel %vm267_vm1, %v252_v27, %v260_v29  ;;  %v268_v33 = vsel %vm267_vm1, %v251_v28, %v257_v30  ;;  %v641_v27 = vld [vmem:[#allocation5 + $0x268] sm:$0xff]  ;;  %v576_v28 = vld [vmem:[#allocation5 + $0x60] sm:$0xff]  ;;  %v575_v30 = vld [vmem:[#allocation5 + $0x58] sm:$0xff] }
  0xe2   : > { %1012 = vmatpush3.msra.mxu0 %v269_v31  ;;  %v640_v29 = vld [vmem:[#allocation5 + $0x260] sm:$0xff]  ;;  %v639_v31 = vld [vmem:[#allocation5 + $0x258] sm:$0xff] }
  0xe3   : > { %1013 = vmatprep.subr.mxu0 %v1245_v16  ;;  %v582_v16 = vld [vmem:[#allocation5 + $0x90] sm:$0xff] }
  0xe4   : > { %1014 = vmatpush3.msra.mxu0 %v268_v33  ;;  %v638_v33 = vld [vmem:[#allocation5 + $0x250] sm:$0xff] }
  0xe5   : > { %1016 = vmatmul.mubr.msk.f32.vlgmr.msra.gmra.mxu0 %vm273_vm2, %v272_v32  ;;  %763 = vmatprep.subr.mxu0 %v659_v47  ;;  %v574_v32 = vld [vmem:[#allocation5 + $0x50] sm:$0xff]  ;;  %v633_v47 = vld [vmem:[#allocation5 + $0x228] sm:$0xff] }
  0xe6   : > { %764 = vmatpush1.msra.mxu0 %v658_v49  ;;  %v632_v49 = vld [vmem:[#allocation5 + $0x220] sm:$0xff] }
  0xe7   : > { %765 = vmatprep.subr.mxu0 %v657_v51  ;;  %v631_v51 = vld [vmem:[#allocation5 + $0x218] sm:$0xff] }
  0xe8   : > { %766 = vmatpush1.msra.mxu0 %v656_v53  ;;  %v630_v53 = vld [vmem:[#allocation5 + $0x210] sm:$0xff] }
  0xe9   : > { %767 = vmatprep.subr.mxu0 %v655_v55  ;;  %v629_v55 = vld [vmem:[#allocation5 + $0x208] sm:$0xff] }
  0xea   : > { %768 = vmatpush1.msra.mxu0 %v654_v57  ;;  %v628_v57 = vld [vmem:[#allocation5 + $0x200] sm:$0xff] }
  0xeb   : > { %769 = vmatprep.subr.mxu0 %v653_v59  ;;  %v691_v59 = vld [vmem:[#allocation5 + $0x3f8] sm:$0xff] }
  0xec   : > { %770 = vmatpush1.msra.mxu0 %v652_v61  ;;  %v690_v61 = vld [vmem:[#allocation5 + $0x3f0] sm:$0xff] }
  0xed   : > { %771 = vmatprep.subr.mxu0 %v651_v63  ;;  %v689_v63 = vld [vmem:[#allocation5 + $0x3e8] sm:$0xff] }
  0xee   : > { %772 = vmatpush1.msra.mxu0 %v650_v4 }
  0xef   : > { %773 = vmatprep.subr.mxu0 %v649_v9 }
  0xf0   : > { %774 = vmatpush1.msra.mxu0 %v648_v13 }
  0xf1   : > { %775 = vmatprep.subr.mxu0 %v647_v15 }
  0xf2   : > { %776 = vmatpush1.msra.mxu0 %v646_v17 }
  0xf3   : > { %777 = vmatprep.subr.mxu0 %v645_v19 }
  0xf4   : > { %778 = vmatpush1.msra.mxu0 %v644_v21 }
  0xf5   : > { %779 = vmatprep.subr.mxu0 %v643_v23 }
  0xf6   : > { %780 = vmatpush1.msra.mxu0 %v642_v25 }
  0xf7   : > { %781 = vmatprep.subr.mxu0 %v641_v27  ;;  %v623_v27 = vld [vmem:[#allocation5 + $0x1d8] sm:$0xff] }
  0xf8   : > { %782 = vmatpush1.msra.mxu0 %v640_v29  ;;  %v686_v29 = vld [vmem:[#allocation5 + $0x3d0] sm:$0xff] }
  0xf9   : > { %783 = vmatprep.subr.mxu0 %v639_v31  ;;  %v685_v31 = vld [vmem:[#allocation5 + $0x3c8] sm:$0xff] }
  0xfa   : > { %784 = vmatpush1.msra.mxu0 %v638_v33  ;;  %v620_v33 = vld [vmem:[#allocation5 + $0x1c0] sm:$0xff] }
 0x1a5   : > { %v343_v35 = vpop.f32.mrf.mxu0 }
 0x1a6   : > { %v347_v36 = vmax.f32 %v343_v35, 0.0  ;;  %v637_v35 = vld [vmem:[#allocation5 + $0x248] sm:$0xff] }
 0x1a7   : > { %v1017_v37 = vpop.f32.mrf.mxu0  ;;  %785 = vmatprep.subr.mxu0 %v637_v35  ;;  %v619_v35 = vld [vmem:[#allocation5 + $0x1b8] sm:$0xff] }
 0x1a8   : > { %1018 = vmatprep.subr.msk.mxu1 %vm365_vm4, %v347_v36  ;;  %v636_v37 = vld [vmem:[#allocation5 + $0x240] sm:$0xff] }
 0x1a9   : > { %1019 = vmatpush3.msk.msra.mxu1 %vm365_vm4, %v347_v36  ;;  %v572_v36 = vld [vmem:[#allocation5 + $0x40] sm:$0xff]  ;;  %786 = vmatpush1.msra.mxu0 %v636_v37 }
 0x1aa   : > { %1021 = vmatmul.mubr.msk.f32.vlgmr.msra.gmra.mxu1 %vm352_vm3, %v349_v38  ;;  %692 = vmatprep.subr.mxu1 %v595_v46  ;;  %v571_v38 = vld [vmem:[#allocation5 + $0x38] sm:$0xff]  ;;  %v569_v46 = vld [vmem:[#allocation5 + $0x28] sm:$0xff] }
 0x1ab   : > { %1023 = vmatprep.mubr.msk.f32.mxu1 %vm352_vm3, %v350_v39  ;;  %693 = vmatpush1.msra.mxu1 %v594_v48  ;;  %v635_v39 = vld [vmem:[#allocation5 + $0x238] sm:$0xff]  ;;  %v568_v48 = vld [vmem:[#allocation5 + $0x20] sm:$0xff] }
 0x1ac   : > { %694 = vmatprep.subr.mxu1 %v593_v50  ;;  %787 = vmatprep.subr.mxu0 %v635_v39  ;;  %v567_v50 = vld [vmem:[#allocation5 + $0x18] sm:$0xff]  ;;  %v682_v39 = vld [vmem:[#allocation5 + $0x3b0] sm:$0xff] }
 0x1ad   : > { %695 = vmatpush1.msra.mxu1 %v592_v52  ;;  %788 = vmatpush1.msra.mxu0 %v634_v45  ;;  %v566_v52 = vld [vmem:[#allocation5 + $0x10] sm:$0xff]  ;;  %v681_v45 = vld [vmem:[#allocation5 + $0x3a8] sm:$0xff] }
 0x1ae   : > { %1024 = vmatmul.mubr.msk.f32.gmra.mxu1 %vm352_vm3, %v351_v40  ;;  %696 = vmatprep.subr.mxu1 %v591_v54  ;;  %v570_v40 = vld [vmem:[#allocation5 + $0x30] sm:$0xff]  ;;  %v565_v54 = vld [vmem:[#allocation5 + $0x8] sm:$0xff] }
 0x1af   : > { %697 = vmatpush1.msra.mxu1 %v590_v56  ;;  %789 = vmatprep.subr.mxu0 %v633_v47  ;;  %v564_v56 = vld [vmem:[#allocation5] sm:$0xff] }
 0x1b0   : > { %698 = vmatprep.subr.mxu1 %v589_v58  ;;  %790 = vmatpush1.msra.mxu0 %v632_v49  ;;  %v627_v58 = vld [vmem:[#allocation5 + $0x1f8] sm:$0xff]  ;;  %v680_v47 = vld [vmem:[#allocation5 + $0x3a0] sm:$0xff] }
 0x1b1   : > { %699 = vmatpush1.msra.mxu1 %v588_v60  ;;  %791 = vmatprep.subr.mxu0 %v631_v51  ;;  %v626_v60 = vld [vmem:[#allocation5 + $0x1f0] sm:$0xff]  ;;  %v679_v49 = vld [vmem:[#allocation5 + $0x398] sm:$0xff] }
 0x1b2   : > { %700 = vmatprep.subr.mxu1 %v587_v62  ;;  %792 = vmatpush1.msra.mxu0 %v630_v53  ;;  %v625_v62 = vld [vmem:[#allocation5 + $0x1e8] sm:$0xff]  ;;  %v614_v51 = vld [vmem:[#allocation5 + $0x190] sm:$0xff] }
 0x1b3   : > { %701 = vmatpush1.msra.mxu1 %v586_v3  ;;  %793 = vmatprep.subr.mxu0 %v629_v55  ;;  %v613_v53 = vld [vmem:[#allocation5 + $0x188] sm:$0xff]  ;;  %v612_v55 = vld [vmem:[#allocation5 + $0x180] sm:$0xff] }
 0x1b4   : > { %702 = vmatprep.subr.mxu1 %v585_v8  ;;  %794 = vmatpush1.msra.mxu0 %v628_v57  ;;  %v611_v57 = vld [vmem:[#allocation5 + $0x178] sm:$0xff] }
 0x1b5   : > { %703 = vmatpush1.msra.mxu1 %v584_v12  ;;  %795 = vmatprep.subr.mxu0 %v691_v59 }
 0x1b6   : > { %704 = vmatprep.subr.mxu1 %v583_v14  ;;  %796 = vmatpush2.msra.mxu0 %v690_v61  ;;  %v674_v61 = vld [vmem:[#allocation5 + $0x370] sm:$0xff] }
 0x1b7   : > { %705 = vmatpush1.msra.mxu1 %v582_v16  ;;  %797 = vmatprep.subr.mxu0 %v689_v63  ;;  %v673_v63 = vld [vmem:[#allocation5 + $0x368] sm:$0xff] }
 0x1b8   : > { %706 = vmatprep.subr.mxu1 %v581_v18 }
 0x1b9   : > { %707 = vmatpush1.msra.mxu1 %v580_v20 }
 0x1ba   : > { %708 = vmatprep.subr.mxu1 %v579_v22 }
 0x1bb   : > { %709 = vmatpush1.msra.mxu1 %v578_v24 }
 0x1bc   : > { %710 = vmatprep.subr.mxu1 %v577_v26  ;;  %v624_v26 = vld [vmem:[#allocation5 + $0x1e0] sm:$0xff] }
 0x1bd   : > { %711 = vmatpush1.msra.mxu1 %v576_v28  ;;  %v622_v28 = vld [vmem:[#allocation5 + $0x1d0] sm:$0xff] }
 0x1be   : > { %712 = vmatprep.subr.mxu1 %v575_v30  ;;  %v621_v30 = vld [vmem:[#allocation5 + $0x1c8] sm:$0xff] }
 0x1bf   : > { %713 = vmatpush1.msra.mxu1 %v574_v32 }
 0x1c0   : > { %714 = vmatprep.subr.mxu1 %v573_v34  ;;  %v684_v34 = vld [vmem:[#allocation5 + $0x3c0] sm:$0xff] }
 0x1c1   : > { %715 = vmatpush1.msra.mxu1 %v572_v36  ;;  %v683_v36 = vld [vmem:[#allocation5 + $0x3b8] sm:$0xff] }
 0x1c2   : > { %716 = vmatprep.subr.mxu1 %v571_v38  ;;  %v618_v38 = vld [vmem:[#allocation5 + $0x1b0] sm:$0xff] }
 0x1c3   : > { %717 = vmatpush1.msra.mxu1 %v570_v40  ;;  %v617_v40 = vld [vmem:[#allocation5 + $0x1a8] sm:$0xff] }
 0x1c4   : > { %718 = vmatprep.subr.mxu1 %v569_v46  ;;  %v616_v46 = vld [vmem:[#allocation5 + $0x1a0] sm:$0xff] }
 0x1c5   : > { %719 = vmatpush1.msra.mxu1 %v568_v48  ;;  %v615_v48 = vld [vmem:[#allocation5 + $0x198] sm:$0xff] }
 0x1c6   : > { %720 = vmatprep.subr.mxu1 %v567_v50 }
 0x1c7   : > { %721 = vmatpush1.msra.mxu1 %v566_v52  ;;  %v678_v52 = vld [vmem:[#allocation5 + $0x390] sm:$0xff] }
 0x1c8   : > { %722 = vmatprep.subr.mxu1 %v565_v54  ;;  %v677_v54 = vld [vmem:[#allocation5 + $0x388] sm:$0xff] }
 0x1c9   : > { %723 = vmatpush1.msra.mxu1 %v564_v56  ;;  %v676_v56 = vld [vmem:[#allocation5 + $0x380] sm:$0xff] }
 0x1ca   : > { %724 = vmatprep.subr.mxu1 %v627_v58  ;;  %v675_v58 = vld [vmem:[#allocation5 + $0x378] sm:$0xff] }
 0x1cb   : > { %725 = vmatpush2.msra.mxu1 %v626_v60  ;;  %v610_v60 = vld [vmem:[#allocation5 + $0x170] sm:$0xff] }
 0x1cc   : > { %726 = vmatprep.subr.mxu1 %v625_v62  ;;  %v609_v62 = vld [vmem:[#allocation5 + $0x168] sm:$0xff] }
 0x1cd   : > { %727 = vmatpush2.msra.mxu1 %v624_v26  ;;  %v598_v26 = vld [vmem:[#allocation5 + $0x110] sm:$0xff] }
 0x1ce   : > { %728 = vmatprep.subr.mxu1 %v623_v27  ;;  %v597_v27 = vld [vmem:[#allocation5 + $0x108] sm:$0xff] }
 0x1cf   : > { %729 = vmatpush2.msra.mxu1 %v622_v28  ;;  %v596_v28 = vld [vmem:[#allocation5 + $0x100] sm:$0xff] }
 0x1d0   : > { %730 = vmatprep.subr.mxu1 %v621_v30 }
 0x1d1   : > { %731 = vmatpush2.msra.mxu1 %v620_v33 }
 0x1d2   : > { %732 = vmatprep.subr.mxu1 %v619_v35 }
 0x1d3   : > { %733 = vmatpush2.msra.mxu1 %v618_v38 }
 0x1d4   : > { %734 = vmatprep.subr.mxu1 %v617_v40 }
 0x1d5   : > { %735 = vmatpush2.msra.mxu1 %v616_v46 }
 0x1d6   : > { %736 = vmatprep.subr.mxu1 %v615_v48 }
 0x1d7   : > { %737 = vmatpush2.msra.mxu1 %v614_v51 }
 0x1d8   : > { %738 = vmatprep.subr.mxu1 %v613_v53 }
 0x1d9   : > { %739 = vmatpush2.msra.mxu1 %v612_v55 }
 0x1da   : > { %740 = vmatprep.subr.mxu1 %v611_v57 }
 0x1db   : > { %741 = vmatpush2.msra.mxu1 %v610_v60 }
 0x1dc   : > { %742 = vmatprep.subr.mxu1 %v609_v62 }
 0x26a   : > { %v1464_v41 = vpop.f32.mrf.mxu1 }
 0x26b   : > { %460 = vrot.lane.b32.xlu1 %v1464_v41, %s1247_s20 }
 0x26c   : > { %v1467_v42 = vpop.f32.mrf.mxu1 }
 0x26d   : > { %458 = vrot.lane.b32.xlu0 %v1467_v42, %s1247_s20 }
 0x26e   : > { %v1470_v43 = vpop.f32.mrf.mxu1 }
 0x270   : > { %v1472_v44 = vpop.f32.mrf.mxu1 }
 0x271   : > { %462 = vrot.lane.b32.xlu1 %v1472_v44, %s1247_s20 }
 0x275   : > { %464 = vrot.lane.b32.xlu1 %v1470_v43, %s1247_s20 }
 0x2dd   : > { %v461_v3 = vpop.permute.xlu1 %460 }
 0x2de   : > { %v471_v4 = vadd.f32 %v1464_v41, %v461_v3  ;;  %v608_v3 = vld [vmem:[#allocation5 + $0x160] sm:$0xff] }
 0x2df   : > { %v459_v8 = vpop.permute.xlu0 %458  ;;  %743 = vmatpush2.msra.mxu1 %v608_v3 }
 0x2e0   : > { %v985_v9 = vmul.f32 -1.442695, %v471_v4  ;;  %v470_v12 = vadd.f32 %v459_v8, %v1467_v42  ;;  %v672_v4 = vld [vmem:[#allocation5 + $0x360] sm:$0xff]  ;;  %v607_v8 = vld [vmem:[#allocation5 + $0x158] sm:$0xff] }
 0x2e1   : > { %744 = vmatprep.subr.mxu1 %v607_v8 }
 0x2e2   : > { %1093 = vpow2.f32 %v985_v9  ;;  %v984_v13 = vmul.f32 -1.442695, %v470_v12  ;;  %v671_v9 = vld [vmem:[#allocation5 + $0x358] sm:$0xff]  ;;  %v606_v12 = vld [vmem:[#allocation5 + $0x150] sm:$0xff] }
 0x2e3   : > { %v463_v14 = vpop.permute.xlu1 %462  ;;  %745 = vmatpush2.msra.mxu1 %v606_v12 }
 0x2e4   : > { %1095 = vpow2.f32 %v984_v13  ;;  %v472_v15 = vadd.f32 %v463_v14, %v1472_v44  ;;  %v688_v44 = vld [vmem:[#allocation5 + $0x3e0] sm:$0xff]  ;;  %v670_v13 = vld [vmem:[#allocation5 + $0x350] sm:$0xff]  ;;  %v605_v14 = vld [vmem:[#allocation5 + $0x148] sm:$0xff] }
 0x2e5   : > { %798 = vmatpush2.msra.mxu0 %v688_v44  ;;  %746 = vmatprep.subr.mxu1 %v605_v14  ;;  %v662_v44 = vld [vmem:[#allocation5 + $0x310] sm:$0xff] }
 0x2e6   : > { %v986_v16 = vmul.f32 -1.442695, %v472_v15  ;;  %v669_v15 = vld [vmem:[#allocation5 + $0x348] sm:$0xff] }
 0x2e7   : > { %v465_v17 = vpop.permute.xlu1 %464 }
 0x2e8   : > { %1097 = vpow2.f32 %v986_v16  ;;  %v473_v18 = vadd.f32 %v1470_v43, %v465_v17  ;;  %v687_v43 = vld [vmem:[#allocation5 + $0x3d8] sm:$0xff]  ;;  %v604_v16 = vld [vmem:[#allocation5 + $0x140] sm:$0xff] }
 0x2e9   : > { %799 = vmatprep.subr.mxu0 %v687_v43  ;;  %v668_v17 = vld [vmem:[#allocation5 + $0x340] sm:$0xff]  ;;  %747 = vmatpush2.msra.mxu1 %v604_v16  ;;  %v661_v43 = vld [vmem:[#allocation5 + $0x308] sm:$0xff] }
 0x2ea   : > { %v987_v19 = vmul.f32 -1.442695, %v473_v18  ;;  %800 = vmatpush2.msra.mxu0 %v686_v29  ;;  %v603_v18 = vld [vmem:[#allocation5 + $0x138] sm:$0xff]  ;;  %v660_v29 = vld [vmem:[#allocation5 + $0x300] sm:$0xff] }
 0x2eb   : > { %801 = vmatprep.subr.mxu0 %v685_v31  ;;  %748 = vmatprep.subr.mxu1 %v603_v18 }
 0x2ec   : > { %1099 = vpow2.f32 %v987_v19  ;;  %802 = vmatpush2.msra.mxu0 %v684_v34  ;;  %v667_v19 = vld [vmem:[#allocation5 + $0x338] sm:$0xff] }
 0x2ed   : > { %803 = vmatprep.subr.mxu0 %v683_v36 }
 0x2ee   : > { %804 = vmatpush2.msra.mxu0 %v682_v39 }
 0x2ef   : > { %v1094_v20 = vpop.eup %1093  ;;  %805 = vmatprep.subr.mxu0 %v681_v45 }
 0x2f0   : > { %v487_v21 = vadd.f32 1.0, %v1094_v20  ;;  %806 = vmatpush2.msra.mxu0 %v680_v47  ;;  %v602_v20 = vld [vmem:[#allocation5 + $0x130] sm:$0xff] }
 0x2f1   : > { %v1096_v41 = vpop.eup %1095  ;;  %807 = vmatprep.subr.mxu0 %v679_v49  ;;  %749 = vmatpush2.msra.mxu1 %v602_v20 }
 0x2f2   : > { %1101 = vrcp.f32 %v487_v21  ;;  %v486_v22 = vadd.f32 1.0, %v1096_v41  ;;  %808 = vmatpush2.msra.mxu0 %v678_v52  ;;  %v666_v21 = vld [vmem:[#allocation5 + $0x330] sm:$0xff]  ;;  %v601_v41 = vld [vmem:[#allocation5 + $0x128] sm:$0xff] }
 0x2f3   : > { %809 = vmatprep.subr.mxu0 %v677_v54  ;;  %750 = vmatprep.subr.mxu1 %v601_v41 }
 0x2f4   : > { %1103 = vrcp.f32 %v486_v22  ;;  %810 = vmatpush2.msra.mxu0 %v676_v56  ;;  %v665_v22 = vld [vmem:[#allocation5 + $0x328] sm:$0xff] }
 0x2f5   : > { %v1098_v42 = vpop.eup %1097  ;;  %811 = vmatprep.subr.mxu0 %v675_v58 }
 0x2f6   : > { %v488_v23 = vadd.f32 1.0, %v1098_v42  ;;  %812 = vmatpush2.msra.mxu0 %v674_v61  ;;  %v600_v42 = vld [vmem:[#allocation5 + $0x120] sm:$0xff] }
 0x2f7   : > { %813 = vmatprep.subr.mxu0 %v673_v63  ;;  %751 = vmatpush2.msra.mxu1 %v600_v42 }
 0x2f8   : > { %1105 = vrcp.f32 %v488_v23  ;;  %814 = vmatpush2.msra.mxu0 %v672_v4  ;;  %v664_v23 = vld [vmem:[#allocation5 + $0x320] sm:$0xff] }
 0x2f9   : > { %v1100_v24 = vpop.eup %1099  ;;  %815 = vmatprep.subr.mxu0 %v671_v9 }
 0x2fa   : > { %v489_v25 = vadd.f32 1.0, %v1100_v24  ;;  %816 = vmatpush2.msra.mxu0 %v670_v13  ;;  %v599_v24 = vld [vmem:[#allocation5 + $0x118] sm:$0xff] }
 0x2fb   : > { %817 = vmatprep.subr.mxu0 %v669_v15  ;;  %752 = vmatprep.subr.mxu1 %v599_v24 }
 0x2fc   : > { %1107 = vrcp.f32 %v489_v25  ;;  %818 = vmatpush2.msra.mxu0 %v668_v17  ;;  %v663_v25 = vld [vmem:[#allocation5 + $0x318] sm:$0xff]  ;;  %753 = vmatpush2.msra.mxu1 %v598_v26 }
 0x2fd   : > { %819 = vmatprep.subr.mxu0 %v667_v19  ;;  %754 = vmatprep.subr.mxu1 %v597_v27 }
 0x2fe   : > { %820 = vmatpush2.msra.mxu0 %v666_v21  ;;  %755 = vmatpush2.msra.mxu1 %v596_v28  ;;  %v846_v28 = vlaneseq }
 0x2ff   : > { %v1102_v32 = vpop.eup %1101  ;;  %821 = vmatprep.subr.mxu0 %v665_v22 }
 0x300   : > { %505 = vperm.xlu1 %1091, %v1102_v32   ;;  %822 = vmatpush2.msra.mxu0 %v664_v23 }
 0x301   : > { %v1104_v37 = vpop.eup %1103  ;;  %823 = vmatprep.subr.mxu0 %v663_v25 }
 0x302   : > { %500 = vperm.xlu0 %1092, %v1104_v37   ;;  %824 = vmatpush2.msra.mxu0 %v662_v44 }
 0x303   : > { %825 = vmatprep.subr.mxu0 %v661_v43 }
 0x304   : > { %826 = vmatpush2.msra.mxu0 %v660_v29  ;;  %v847_v29 = vshrl.u32 %v846_v28, 7 }
 0x305   : > { %v1106_v50 = vpop.eup %1105 }
 0x306   : > { %510 = vperm.xlu1 %1091, %v1106_v50  }
 0x309   : > { %v1108_v59 = vpop.eup %1107 }
 0x30a   : > { %515 = vperm.xlu0 %1092, %v1108_v59  }
 0x37b   : > { %v506_v30 = vpop.permute.xlu1 %505 }
 0x37c   : > { %v1487_v35 = vmul.f32 %v506_v30, %v1425_v6  ;;  %v1490_v36 = vmul.f32 %v506_v30, %v1427_v7  ;;  %v848_v30 = vsub.s32 0, %v847_v29 }
 0x37d   : > { %v501_v31 = vpop.permute.xlu0 %500 }
 0x37e   : > { %v1481_v32 = vmul.f32 %v501_v31, %v1433_v10  ;;  %v1484_v33 = vmul.f32 %v501_v31, %v1435_v11 }
 0x380   : > { %v526_v10 = vadd.f32 %v1487_v35, %v1481_v32  ;;  %v535_v11 = vadd.f32 %v1490_v36, %v1484_v33 }
 0x381   : > { %v511_v34 = vpop.permute.xlu1 %510 }
 0x382   : > { %v1493_v37 = vmul.f32 %v511_v34, %v1417_v2  ;;  %v1496_v38 = vmul.f32 %v511_v34, %v1423_v5 }
 0x384   : > { %v527_v40 = vadd.f32 %v526_v10, %v1493_v37  ;;  %v536_v6 = vadd.f32 %v535_v11, %v1496_v38  ;;  %v546_v5 = vmax.f32 %v1481_v32, %v1493_v37  ;;  %v555_v45 = vmax.f32 %v1484_v33, %v1496_v38 }
 0x385   : > { %v516_v39 = vpop.permute.xlu0 %515 }
 0x386   : > { %v1505_v7 = vmul.f32 %v516_v39, %v1413_v0  ;;  %v1508_v2 = vmul.f32 %v516_v39, %v1415_v1 }
 0x388   : > { %v528_v46 = vadd.f32 %v527_v40, %v1505_v7  ;;  %v537_v47 = vadd.f32 %v536_v6, %v1508_v2  ;;  %v547_v48 = vmax.f32 %v1487_v35, %v1505_v7  ;;  %v556_v0 = vmax.f32 %v1490_v36, %v1508_v2 }
 0x38a   : > { %v529_v49 = vrot.slane %v528_v46, 4  ;;  %v538_v50 = vrot.slane %v537_v47, 4  ;;  %v548_v1 = vmax.f32 %v546_v5, %v547_v48  ;;  %v557_v51 = vmax.f32 %v555_v45, %v556_v0 }
 0x38c   : > { %v530_v52 = vadd.f32 %v529_v49, %v528_v46  ;;  %v539_v53 = vadd.f32 %v538_v50, %v537_v47  ;;  %v549_v54 = vrot.slane %v548_v1, 4  ;;  %v558_v55 = vrot.slane %v557_v51, 4 }
 0x38e   : > { %v531_v56 = vrot.slane %v530_v52, 2  ;;  %v550_v57 = vmax.f32 %v548_v1, %v549_v54  ;;  %v540_v58 = vrot.slane %v539_v53, 2  ;;  %v559_v59 = vmax.f32 %v557_v51, %v558_v55 }
 0x390   : > { %v532_v60 = vadd.f32 %v531_v56, %v530_v52  ;;  %v551_v61 = vrot.slane %v550_v57, 2  ;;  %v541_v62 = vadd.f32 %v540_v58, %v539_v53  ;;  %v560_v63 = vrot.slane %v559_v59, 2 }
 0x392   : > { %v533_v3 = vrot.slane %v532_v60, 1  ;;  %v542_v4 = vrot.slane %v541_v62, 1  ;;  %v561_v8 = vmax.f32 %v559_v59, %v560_v63  ;;  %v552_v9 = vmax.f32 %v550_v57, %v551_v61 }
 0x394   : > { %v534_v12 = vadd.f32 %v533_v3, %v532_v60  ;;  %v543_v13 = vadd.f32 %v542_v4, %v541_v62  ;;  %v562_v14 = vrot.slane %v561_v8, 1  ;;  %v553_v15 = vrot.slane %v552_v9, 1 }
 0x396   : > { %v544_v16 = vmul.f32 0.03125, %v534_v12  ;;  %v545_v17 = vmul.f32 0.03125, %v543_v13  ;;  %v563_v18 = vmax.f32 %v561_v8, %v562_v14  ;;  %v554_v19 = vmax.f32 %v552_v9, %v553_v15 }
 0x398   : > { %756 = vmatprep.mubr.f32.mxu1 %v545_v17  ;;  %827 = vmatprep.mubr.f32.mxu0 %v563_v18 }
 0x399   : > { %757 = vmatmul.mubr.f32.vlgmr.msra.gmra.mxu1 %v544_v16  ;;  %828 = vmatmul.mubr.f32.vlgmr.msra.gmra.mxu0 %v554_v19 }
 0x459   : > { %v758_v20 = vpop.f32.mrf.mxu1  ;;  %v829_v21 = vpop.f32.mrf.mxu0 }
 0x45a   : > { %v830_v41 = vadd.f32 %v829_v21, %v758_v20 }
 0x45b   : > { %v760_v22 = vpop.f32.mrf.mxu1  ;;  %v831_v42 = vpop.f32.mrf.mxu0 }
 0x45c   : > { %v988_v23 = vmul.f32 -1.442695, %v830_v41  ;;  %v832_v24 = vadd.f32 %v831_v42, %v760_v22 }
 0x45e   : > { %1109 = vpow2.f32 %v988_v23  ;;  %v989_v25 = vmul.f32 -1.442695, %v832_v24 }
 0x460   : > { %1111 = vpow2.f32 %v989_v25 }
 0x46b   : > { %v1110_v26 = vpop.eup %1109 }
 0x46c   : > { %v840_v44 = vadd.f32 1.0, %v1110_v26 }
 0x46d   : > { %v1112_v27 = vpop.eup %1111 }
 0x46e   : > { %1113 = vrcp.f32 %v840_v44  ;;  %v841_v43 = vadd.f32 1.0, %v1112_v27 }
 0x470   : > { %1115 = vrcp.f32 %v841_v43 }
 0x47b   : > { %v1114_v31 = vpop.eup %1113 }
 0x47c   : > { %v849_v34 = vrot.slane %v1114_v31, %v848_v30 }
 0x47d   : > { %v1116_v10 = vpop.eup %1115 }
 0x47e   : > { %v854_v11 = vmul.f32 %v849_v34, %v1481_v32  ;;  %v856_v39 = vmul.f32 %v849_v34, %v1487_v35  ;;  %v858_v40 = vmul.f32 %v849_v34, %v1493_v37  ;;  %v860_v6 = vmul.f32 %v849_v34, %v1505_v7 }
 0x47f   : > { %v853_v5 = vrot.slane %v1116_v10, %v848_v30 }
 0x480   : > { %862 = vst [vmem:[%s230_s7] sm:$0xff] %v854_v11  ;;  %864 = vst [vmem:[%s230_s7 + $0x10] sm:$0xff] %v856_v39 }
 0x481   : > { %866 = vst [vmem:[%s230_s7 + $0x20] sm:$0xff] %v858_v40  ;;  %868 = vst [vmem:[%s230_s7 + $0x30] sm:$0xff] %v860_v6  ;;  %v855_v32 = vmul.f32 %v853_v5, %v1484_v33  ;;  %v857_v35 = vmul.f32 %v853_v5, %v1490_v36  ;;  %v859_v37 = vmul.f32 %v853_v5, %v1496_v38 }
 0x482   : > { %v861_v7 = vmul.f32 %v853_v5, %v1508_v2 }
 0x483   : > { %863 = vst [vmem:[%s230_s7 + $0x8] sm:$0xff] %v855_v32  ;;  %865 = vst [vmem:[%s230_s7 + $0x18] sm:$0xff] %v857_v35 }
 0x484   : > { %867 = vst [vmem:[%s230_s7 + $0x28] sm:$0xff] %v859_v37  ;;  %869 = vst [vmem:[%s230_s7 + $0x38] sm:$0xff] %v861_v7 }
 0x485   : > { %1184 = shalt.err (!%p1181_p0)
}
 0x486   : > { %s1185_s26 = scalar_lea.hbm %s1530_s8, 1024  ;;  %s1189_s14 = scalar_lea.hbm %s1583_s4, 2048 }
 0x487   : > { %p1186_p5 = scmp.ne.s32.totalorder %s1530_s8, %s1185_s26  ;;  %p1190_p4 = scmp.lt.s32.totalorder %s1530_s8, %s1583_s4 }
 0x488   : > { %p1191_p6 = scmp.lt.s32.totalorder %s1189_s14, %s1185_s26 }
 0x489   : > { %p1187_p2 = pnand %p1186_p5, %p1599_p11 }
 0x48a   : > { %p1192_p8 = por %p1191_p6, %p1190_p4 }
 0x48b   : > { %p1188_p1 = pneg %p1187_p2 }
 0x48d   : > { %p1193_p3 = pnand %p1192_p8, %p1188_p1 }
 0x48f   : > { %1196 = shalt.err (!%p1193_p3)
}
 0x490   : > { %s1250_s25 = smov 256   ;;  %s1251_s7 = smov 16  }
 0x491   : > { %1032 = dma.vmem_to_hbm [thread:$0]  (%p1599_p11), %s1532_s12, 1024, %s1530_s8, %s871_s21, %s1250_s25, %s1250_s25, %s1251_s7  }
 0x492 PF: > { %s899_s28 = sand.u32 1, %s1227_s15   ;;  %p1600_p7 = scmp.ne.s32.totalorder %s1589_s22, 0 }
 0x493   : > { %p1601_p9 = scmp.ge.s32.totalorder %s1239_s18, 2  ;;  %s900_s19 = scalar_lea.sflag [#allocation4], %s899_s28 }
 0x495   : > { %p1043_p10 = pnand %p1601_p9, %p1600_p7 }
 0x497   : > { %p1044_p12 = pneg %p1043_p10 }
 0x499   : > { %1222 = dma.done.wait (%p1044_p12), %s900_s19, 1024  }
 0x49a   : > { %1224 = vsyncadd (%p1044_p12), %s900_s19, 4294966272  ;;  %p18_p13 = scmp.ge.s32.totalorder %s1331_s27, 4   ;;  %s1602_s15 = smov %s1231_s16 }
 0x49b   : > { %s1603_s16 = smov %s1235_s17  ;;  %s1604_s17 = smov %s1351_s9 }
 0x49c   : > { %s1605_s18 = smov %s1331_s27  ;;  %20 = sbr.rel (!%p18_p13) target bundleno = 6 (0x6), region = 85 }
 0x4a1   :  { %905 = vsyncpa [#allocation3], 1 }
 0x4a2   :  { %907 = vsyncpa [#allocation3 + $0x1], 1 }
 0x4a3   :  { %908 = vsyncpa [#allocation6], 1 }
 0x4a4   :  { %909 = vsyncpa [#allocation4], 1 }
 0x4a5   :  { %911 = vsyncpa [#allocation4 + $0x1], 1 }

</bundles_post_ra>
